<compile_context>
chip_gen: v6e
topology: v6e:2x2x1
jax: 0.10.0
libtpu: 0.0.40
codegen_flags: <defaults>
</compile_context>

<pallas_src>
import math
from functools import lru_cache

import numpy as np
import jax
import jax.numpy as jnp
from jax.experimental import pallas as pl
from jax.experimental.pallas import tpu as pltpu

# istft parameters (match the PyTorch module defaults)
N_FFT = 512
HOP = 100
WIN_LEN = 400
F_HALF = N_FFT // 2          # 256 bins kept (zero Nyquist bin dropped -- exact)
K_SPEC = 2 * F_HALF          # 512  [real | imag] per frame

NBLK = 256                   # output-block width (lane-dense, multiple of 128)
F_PER_BLK = 8                # max frames overlapping a 256-sample output block
                             # (open interval width (NBLK + N_FFT)/HOP = 7.68)


def _round_up(x, m):
    return (x + m - 1) // m * m


# ---------------------------------------------------------------------------
# Host-side precompute: banded fused basis + per-block frame offsets.
# ---------------------------------------------------------------------------
@lru_cache(maxsize=None)
def _banded_basis_and_offsets(T: int):
    """Returns (basis[n_blocks, 8, 512, 256] f32, f0[n_blocks] i32)."""
    L = HOP * (T - 1)
    n_blocks = _round_up(L, NBLK) // NBLK
    T_pad = max(T, F_PER_BLK)

    # Inverse real-DFT as a matmul; Nyquist rows omitted (that bin is the
    # explicit zero pad in the PyTorch module, so this is exact).
    # irfft ignores Im(X_0): the k=0 "-sin" row is identically zero.
    k = np.arange(F_HALF)
    n = np.arange(N_FFT)
    ang = 2.0 * np.pi * ((k[:, None] * n[None, :]) % N_FFT) / N_FFT
    c = np.where(k == 0, 1.0, 2.0)[:, None]
    idft = np.concatenate([c * np.cos(ang), -c * np.sin(ang)], axis=0) / N_FFT

    # torch.istft default window = ones(win_length), centered / padded to n_fft.
    pad_l = (N_FFT - WIN_LEN) // 2
    win = np.zeros(N_FFT, np.float64)
    win[pad_l:pad_l + WIN_LEN] = 1.0
    wb = idft * win[None, :]                          # (512, 512) windowed iDFT

    # OLA envelope over the center-trimmed output (>= 1 for this win/hop, so
    # the 1/env fold is safe; torch.istft would raise NOLA otherwise).
    L_full = N_FFT + HOP * (T - 1)
    env = np.zeros(L_full, np.float64)
    for t in range(T):
        env[t * HOP:t * HOP + N_FFT] += win * win
    env = env[N_FFT // 2:N_FFT // 2 + L]              # length L

    f0 = np.zeros(n_blocks, np.int32)
    basis = np.zeros((n_blocks, F_PER_BLK, K_SPEC, NBLK), np.float32)
    for nb in range(n_blocks):
        blk_start = nb * NBLK                          # post-trim sample of col 0
        # smallest frame t with t*HOP > blk_start - N_FFT//2 (strict overlap)
        lo = (blk_start - N_FFT // 2) // HOP + 1
        lo = max(0, min(lo, T_pad - F_PER_BLK))
        f0[nb] = lo
        for j in range(F_PER_BLK):
            t = lo + j
            if t >= T:
                continue                               # padded frame -> zero rows
            fs = t * HOP - N_FFT // 2                  # post-trim frame start
            a = max(fs, blk_start, 0)
            b = min(fs + N_FFT, blk_start + NBLK, L)
            if a >= b:
                continue                               # no overlap with this block
            cols = np.arange(a, b)
            basis[nb, j, :, a - blk_start:b - blk_start] = (
                wb[:, a - fs:b - fs] / env[cols][None, :]).astype(np.float32)
    return basis, f0


# ---------------------------------------------------------------------------
# Pallas kernel: one (frame -> output block) partial matmul per grid step,
# accumulated over the 8 contributing frames (innermost grid axis).
# ---------------------------------------------------------------------------
def _istft_band_kernel(f0_ref, xs_ref, w_ref, out_ref, acc_ref):
    # f0_ref : SMEM (n_blocks,) scalar-prefetched frame offsets (used in index_maps)
    # xs_ref : (BBLK, 512)   bf16 spectrum of one frame, one batch block
    # w_ref  : (512, NBLK)   bf16 banded basis block for (output block, frame)
    # out_ref: (BBLK, NBLK)  f32
    # acc_ref: (BBLK, NBLK)  f32 VMEM accumulator
    j = pl.program_id(2)

    @pl.when(j == 0)
    def _():
        acc_ref[...] = jnp.zeros_like(acc_ref)

    acc_ref[...] += jnp.dot(xs_ref[...], w_ref[...],
                            preferred_element_type=jnp.float32)

    @pl.when(j == pl.num_programs(2) - 1)
    def _():
        out_ref[...] = acc_ref[...].astype(out_ref.dtype)


def istft_pallas(x):
    B, C, T, f_half = x.shape
    assert C == 2 and f_half == F_HALF and T >= 2
    L = HOP * (T - 1)

    basis_np, f0_np = _banded_basis_and_offsets(T)
    n_blocks = int(f0_np.shape[0])
    L_pad = n_blocks * NBLK
    T_pad = max(T, F_PER_BLK)

    BBLK = min(128, _round_up(B, 8))
    B_pad = _round_up(B, BBLK)

    # Per frame: [real_0..255 | imag_0..255]; frames-major layout so a single
    # frame is a contiguous, fully aligned (B_pad, 512) slab.
    x = x.astype(jnp.float32)
    xs = jnp.concatenate([x[:, 0], x[:, 1]], axis=-1)        # (B, T, 512)
    xs = jnp.transpose(xs, (1, 0, 2))                        # (T, B, 512)
    xs = jnp.pad(xs, ((0, T_pad - T), (0, B_pad - B), (0, 0)))
    xs = xs.astype(jnp.bfloat16)

    # Banded basis, streamed in bf16 (dominant HBM traffic -> 2x fewer bytes).
    w = jnp.asarray(
        basis_np.reshape(n_blocks * F_PER_BLK, K_SPEC, NBLK), dtype=jnp.bfloat16)
    f0 = jnp.asarray(f0_np, dtype=jnp.int32)

    grid = (B_pad // BBLK, n_blocks, F_PER_BLK)
    out = pl.pallas_call(
        _istft_band_kernel,
        out_shape=jax.ShapeDtypeStruct((B_pad, L_pad), jnp.float32),
        grid_spec=pltpu.PrefetchScalarGridSpec(
            num_scalar_prefetch=1,
            grid=grid,
            in_specs=[
                # spectra: frame f0[n]+j of batch block b
                pl.BlockSpec((None, BBLK, K_SPEC),
                             lambda b, n, j, f0_ref: (f0_ref[n] + j, b, 0)),
                # banded basis block for (output block n, local frame j)
                pl.BlockSpec((None, K_SPEC, NBLK),
                             lambda b, n, j, f0_ref: (n * F_PER_BLK + j, 0, 0)),
            ],
            out_specs=pl.BlockSpec((BBLK, NBLK),
                                   lambda b, n, j, f0_ref: (b, n)),
            scratch_shapes=[pltpu.VMEM((BBLK, NBLK), jnp.float32)],
        ),
        compiler_params=pltpu.CompilerParams(
            dimension_semantics=("parallel", "parallel", "arbitrary"),
            vmem_limit_bytes=32 * 1024 * 1024,
        ),
    )(f0, xs, w)
    return out[:B, :L].reshape(B, 1, L)


# ---------------------------------------------------------------------------
# Pure-JAX reference with torch.istft semantics (validation only).
# ---------------------------------------------------------------------------
def istft_ref(x):
    B, C, T, _ = x.shape
    L = HOP * (T - 1)
    L_full = N_FFT + HOP * (T - 1)
    x_pad = jnp.pad(x.astype(jnp.float32), ((0, 0), (0, 0), (0, 0), (0, 1)))
    spec = x_pad[:, 0] + 1j * x_pad[:, 1]                       # (B, T, 257)
    frames = jnp.fft.irfft(spec, n=N_FFT, axis=-1)              # (B, T, 512)
    pad_l = (N_FFT - WIN_LEN) // 2
    win = jnp.zeros((N_FFT,), jnp.float32).at[pad_l:pad_l + WIN_LEN].set(1.0)
    fw = frames * win
    y = jnp.zeros((B, L_full), jnp.float32)
    env = jnp.zeros((L_full,), jnp.float32)
    for t in range(T):
        y = y.at[:, t * HOP: t * HOP + N_FFT].add(fw[:, t])
        env = env.at[t * HOP: t * HOP + N_FFT].add(win * win)
    y = y[:, N_FFT // 2: N_FFT // 2 + L] / env[N_FFT // 2: N_FFT // 2 + L]
    return y[:, None, :]


if __name__ == "__main__":
    B, T = 2, 16                               # small shapes; T=16 exercises banding
    key = jax.random.PRNGKey(0)
    x = jax.random.normal(key, (B, 2, T, N_FFT // 2), dtype=jnp.float32)

    out = jax.block_until_ready(istft_pallas(x))

    assert out.shape == (B, 1, HOP * (T - 1)), out.shape
    ref = istft_ref(x)
    err = float(jnp.max(jnp.abs(out - ref)))
    assert err < 2e-3, f"max abs error {err}"
    print("KERNEL_OK")
</pallas_src>

<mosaic_0001>
module attributes {stable_mosaic.version = 11 : i64} {
  func.func @_istft_band_kernel(%arg0: i32, %arg1: i32, %arg2: i32, %arg3: memref<6xi32, #tpu.memory_space<smem>>, %arg4: memref<1x8x512xbf16, #tpu.memory_space<vmem>>, %arg5: memref<1x512x256xbf16, #tpu.memory_space<vmem>>, %arg6: memref<8x256xf32, #tpu.memory_space<vmem>>, %arg7: memref<8x256xf32, #tpu.memory_space<vmem>>) attributes {dimension_semantics = [#tpu.dimension_semantics<parallel>, #tpu.dimension_semantics<parallel>, #tpu.dimension_semantics<arbitrary>], iteration_bounds = array<i64: 1, 6, 8>, scalar_prefetch = 1 : i64, scratch_operands = 1 : i64, tpu.core_type = #tpu.core_type<tc>, window_params = [{transform_indices = @transform_0, window_bounds = array<i64: 1, 8, 512>}, {transform_indices = @transform_1, window_bounds = array<i64: 1, 512, 256>}, {transform_indices = @transform_2, window_bounds = array<i64: 8, 256>}]} {
    %c0_i32 = arith.constant 0 : i32
    %0 = arith.cmpi eq, %arg2, %c0_i32 : i32
    %1 = arith.extui %0 : i1 to i32
    %c0_i32_0 = arith.constant 0 : i32
    %2 = arith.cmpi ne, %1, %c0_i32_0 : i32
    scf.if %2 {
      %cst_11 = arith.constant 0.000000e+00 : f32
      %14 = vector.broadcast %cst_11 : f32 to vector<8x256xf32>
      %c0_12 = arith.constant 0 : index
      %c0_13 = arith.constant 0 : index
      %15 = vector.load %arg7[%c0_12, %c0_13] : memref<8x256xf32, #tpu.memory_space<vmem>>, vector<8x256xf32>
      tpu.vector_store %arg7[%c0_12, %c0_13], %14 {strides = array<i32>} : memref<8x256xf32, #tpu.memory_space<vmem>>, vector<8x256xf32>,
    } else {
    }
    %c0 = arith.constant 0 : index
    %c0_1 = arith.constant 0 : index
    %3 = vector.load %arg7[%c0, %c0_1] : memref<8x256xf32, #tpu.memory_space<vmem>>, vector<8x256xf32>
    %c0_2 = arith.constant 0 : index
    %c0_3 = arith.constant 0 : index
    %c0_4 = arith.constant 0 : index
    %4 = vector.load %arg4[%c0_2, %c0_3, %c0_4] : memref<1x8x512xbf16, #tpu.memory_space<vmem>>, vector<1x8x512xbf16>
    %5 = vector.shape_cast %4 : vector<1x8x512xbf16> to vector<8x512xbf16>
    %c0_5 = arith.constant 0 : index
    %c0_6 = arith.constant 0 : index
    %c0_7 = arith.constant 0 : index
    %6 = vector.load %arg5[%c0_5, %c0_6, %c0_7] : memref<1x512x256xbf16, #tpu.memory_space<vmem>>, vector<1x512x256xbf16>
    %7 = vector.shape_cast %6 : vector<1x512x256xbf16> to vector<512x256xbf16>
    %cst = arith.constant dense<0.000000e+00> : vector<8x256xf32>
    %8 = tpu.matmul %5, %7, %cst {dimension_numbers = #tpu.dot_dimension_numbers<[1], [0], [0], [1], [0, 0, 1, 1], [], []>} : vector<8x512xbf16>, vector<512x256xbf16>, vector<8x256xf32> -> vector<8x256xf32>
    %9 = arith.addf %3, %8 : vector<8x256xf32>
    %c0_8 = arith.constant 0 : index
    %c0_9 = arith.constant 0 : index
    %10 = vector.load %arg7[%c0_8, %c0_9] : memref<8x256xf32, #tpu.memory_space<vmem>>, vector<8x256xf32>
    tpu.vector_store %arg7[%c0_8, %c0_9], %9 {strides = array<i32>} : memref<8x256xf32, #tpu.memory_space<vmem>>, vector<8x256xf32>,
    %c7_i32 = arith.constant 7 : i32
    %11 = arith.cmpi eq, %arg2, %c7_i32 : i32
    %12 = arith.extui %11 : i1 to i32
    %c0_i32_10 = arith.constant 0 : i32
    %13 = arith.cmpi ne, %12, %c0_i32_10 : i32
    scf.if %13 {
      %c0_11 = arith.constant 0 : index
      %c0_12 = arith.constant 0 : index
      %14 = vector.load %arg7[%c0_11, %c0_12] : memref<8x256xf32, #tpu.memory_space<vmem>>, vector<8x256xf32>
      %c0_13 = arith.constant 0 : index
      %c0_14 = arith.constant 0 : index
      %15 = vector.load %arg6[%c0_13, %c0_14] : memref<8x256xf32, #tpu.memory_space<vmem>>, vector<8x256xf32>
      tpu.vector_store %arg6[%c0_13, %c0_14], %14 {strides = array<i32>} : memref<8x256xf32, #tpu.memory_space<vmem>>, vector<8x256xf32>,
    } else {
    }
    return
  }
  func.func @transform_0(%arg0: i32, %arg1: i32, %arg2: i32, %arg3: memref<6xi32, #tpu.memory_space<smem>>) -> (i32, i32, i32) {
    %0 = arith.index_cast %arg1 : i32 to index
    %1 = memref.load %arg3[%0] : memref<6xi32, #tpu.memory_space<smem>>
    %2 = arith.addi %1, %arg2 : i32
    %c0_i32 = arith.constant 0 : i32
    %c0_i32_0 = arith.constant 0 : i32
    return %2, %arg0, %c0_i32 : i32, i32, i32
  }
  func.func @transform_1(%arg0: i32, %arg1: i32, %arg2: i32, %arg3: memref<6xi32, #tpu.memory_space<smem>>) -> (i32, i32, i32) {
    %c8_i32 = arith.constant 8 : i32
    %0 = arith.muli %arg1, %c8_i32 : i32
    %1 = arith.addi %0, %arg2 : i32
    %c0_i32 = arith.constant 0 : i32
    %c0_i32_0 = arith.constant 0 : i32
    %c0_i32_1 = arith.constant 0 : i32
    return %1, %c0_i32, %c0_i32_0 : i32, i32, i32
  }
  func.func @transform_2(%arg0: i32, %arg1: i32, %arg2: i32, %arg3: memref<6xi32, #tpu.memory_space<smem>>) -> (i32, i32) {
    %c0_i32 = arith.constant 0 : i32
    return %arg0, %arg1 : i32, i32
  }
}

</mosaic_0001>

<bundles_post_ra>
// kernel: tpu_custom_call.1
= control target key start
LH: loop header
LB: loop body
LE: loop exit
PB: predicated region body
PF: predicated region fallthrough
CT: control target
= control target key end

     0   :  { %s1432_s12 = smov [#allocation4]   ;;  %s1838_s0 = inlined_call_operand.hbm [shape: s32[6], index: 0, kind: input, shape index: {}]   ;;  %s1839_s1 = inlined_call_operand.hbm [shape: bf16[16,8,512], index: 1, kind: input, shape index: {}]   ;;  %s1840_s2 = inlined_call_operand.hbm [shape: bf16[48,512,256], index: 2, kind: input, shape index: {}]   ;;  %s1841_s3 = inlined_call_operand.hbm [shape: f32[8,1536], index: 3, kind: output, shape index: {}]  }
   0x1   :  { %1855 = sst [smem:[#allocation27_spill]] %s1841_s3 }
   0x2   :  { %9 = dma.hbm_to_smem %s1838_s0, 16, %s1432_s12, [#allocation3] }
   0x3   :  { %1362 = dma.done.wait [#allocation3], 16 }
   0x4   :  { %1363 = vsyncadd [#allocation3], 4294967280 }
   0x5   :  { %11 = sfence }
   0x6   :  { %12 = vsyncpa [#allocation6], 0 }
   0x7   :  { %14 = vsyncpa [#allocation6 + $0x1], 0 }
   0x8   :  { %15 = vsyncpa [#allocation9], 0 }
   0x9   :  { %17 = vsyncpa [#allocation9 + $0x1], 0 }
   0xa   :  { %18 = vsyncpa [#allocation7], 0 }
   0xb   :  { %20 = vsyncpa [#allocation7 + $0x1], 0  ;;  %s1462_s15 = smov 0   ;;  %s1464_s16 = smov 0  }
   0xc   :  { %s1466_s17 = smov 0   ;;  %s1468_s18 = smov 0  }
   0xd   :  { %s1470_s19 = smov 0   ;;  %s1472_s0 = smov 0  }
   0xe   :  { %s1474_s20 = smov 0   ;;  %s1476_s21 = smov 0  }
   0xf   :  { %s1478_s22 = smov 0   ;;  %s1480_s23 = smov 0  }
  0x10   :  { %s1482_s24 = smov 0   ;;  %s1484_s25 = smov 0  }
  0x11   :  { %s1486_s26 = smov 0   ;;  %s1488_s27 = smov 0  }
  0x12 LB: > { %1856 = sst [smem:[#allocation17_spill]] %s1378_s15  ;;  %s882_s28 = sadd.s32 4294967295, %s1430_s27   ;;  %s1430_s27 = sphi %s1488_s27, %s26_s27   ;;  %s1426_s26 = sphi %s1486_s26, %s1907_s26   ;;  %s1422_s25 = sphi %s1484_s25, %s1906_s25   ;;  %s1418_s24 = sphi %s1482_s24, %s1905_s24   ;;  %s1414_s23 = sphi %s1480_s23, %s1904_s23   ;;  %s1410_s22 = sphi %s1478_s22, %s1894_s22   ;;  %s1406_s21 = sphi %s1476_s21, %s1903_s21   ;;  %s1402_s20 = sphi %s1474_s20, %s1902_s20   ;;  %s1398_s0 = sphi %s1472_s0, %s1901_s0   ;;  %s1394_s19 = sphi %s1470_s19, %s1900_s19   ;;  %s1390_s18 = sphi %s1468_s18, %s1899_s18   ;;  %s1386_s17 = sphi %s1466_s17, %s1892_s17   ;;  %s1382_s16 = sphi %s1464_s16, %s1898_s16   ;;  %s1378_s15 = sphi %s1462_s15, %s1897_s15  }
  0x13   : > { %1857 = sst [smem:[#allocation18_spill]] %s1386_s17  ;;  %s883_s29 = sadd.s32 4294967294, %s1430_s27  }
  0x14   : > { %1858 = sst [smem:[#allocation19_spill]] %s1410_s22  ;;  %s38_s30 = sadd.s32 1, %s1422_s25 }
  0x15   : > { %1859 = sst [smem:[#allocation20_spill]] %s1414_s23  ;;  %s41_s4 = sadd.s32 1, %s1426_s26 }
  0x16   : > { %1860 = sst [smem:[#allocation21_spill]] %s1418_s24  ;;  %p39_p0 = scmp.ge.s32.totalorder %s38_s30, 8 }
  0x17   : > { %s49_s5 = sld [smem:[#allocation4 + %s1426_s26]]  ;;  %p65_p1 = scmp.ne.s32.totalorder %s1410_s22, %s1406_s21 }
  0x18   : > { %s1909_s30 = smov (%p39_p0, %s38_s30), 0  ;;  %s1911_s4 = smov (!%p39_p0, %s41_s4), %s1426_s26 }
  0x19   : > { %p1851_p2 = scmp.eq.s32.totalorder %s1430_s27, 0  ;;  %p71_p3 = scmp.ne.s32.totalorder %s1406_s21, %s1402_s20 }
  0x1a   : > { %p43_p4 = scmp.ge.s32.totalorder %s1911_s4, 6  ;;  %p1543_p5 = scmp.eq.s32.totalorder %s882_s28, 0 }
  0x1b   : > { %p1550_p6 = por %p1851_p2, %p65_p1  ;;  %s116_s11 = sadd.s32 1, %s1386_s17 }
  0x1c   : > { %s1861_s7 = scalar_select %p1543_p5, 1, 0 }
  0x1d   : > { %s50_s8 = sadd.s32 %s1422_s25, %s49_s5  ;;  %s1913_s4 = smov (%p43_p4, %s1911_s4), 0 }
  0x1e   : > { %1863 = sst [smem:[#allocation22_spill]] %s1913_s4  ;;  %p1558_p7 = por %p1543_p5, %p71_p3 }
  0x1f   : > { %s51_s12 = sld [smem:[#allocation4 + %s1913_s4]]  ;;  %s112_s13 = ssub.s32 %s1426_s26, %s1913_s4 }
  0x20   : > { %s1864_s10 = scalar_select %p1558_p7, 1, 0 }
  0x21   : > { %p114_p8 = scmp.eq.s32.totalorder %s112_s13, 0  ;;  %p126_p9 = scmp.ne.s32.totalorder %s1386_s17, %s1382_s16 }
  0x22   : > { %p127_p10 = scmp.eq.s32.totalorder %s882_s28, 47  ;;  %p132_p11 = scmp.ne.s32.totalorder %s1382_s16, %s1378_s15 }
  0x23   : > { %s1571_s14 = scalar_select %p114_p8, %s1386_s17, %s116_s11  }
  0x24   : > { %p1573_p12 = por %p127_p10, %p126_p9  ;;  %p133_p13 = scmp.eq.s32.totalorder %s883_s29, 47 }
  0x25   : > { %1865 = sst [smem:[#allocation23_spill]] %s1571_s14  ;;  %p1850_p0 = scmp.lt.s32.totalorder %s1430_s27, 48 }
  0x26   : > { %s1866_s20 = scalar_select %p1573_p12, 1, 0 }
  0x27   : > { %s52_s5 = sadd.s32 %s51_s12, %s1909_s30  ;;  %p1579_p1 = por %p133_p13, %p132_p11 }
  0x28   : > { %1867 = sst [smem:[#allocation24_spill]] %s1866_s20  ;;  %s53_s6 = ssub.s32 %s50_s8, %s52_s5 }
  0x29   : > { %s1868_s13 = scalar_select %p1579_p1, 1, 0 }
  0x2a   : > { %s153_s28 = sand.u32 1, %s1410_s22   ;;  %p56_p3 = scmp.eq.s32.totalorder %s53_s6, 0 }
  0x2b   : > { %1869 = sst [smem:[#allocation25_spill]] %s1868_s13  ;;  %s888_s11 = sshll.u32 %s153_s28, 4 }
  0x2c   : > { %p1588_p4 = pnand %p1850_p0, %p1550_p6  ;;  %s1871_s29 = sadd.s32 1, %s1410_s22 }
  0x2d   : > { %s1595_s12 = scalar_select %p56_p3, %s1410_s22, %s1871_s29  }
  0x2e   : > { %s977_s17 = scalar_select %p1550_p6, [#allocation4], [#allocation11] }
  0x2f   : > { %1872 = sst [smem:[#allocation26_spill]] %s1595_s12  ;;  %s157_s6 = scalar_lea.vmem [#allocation5], %s888_s11 }
  0x30   : > { %s978_s8 = scalar_select %p1550_p6, %s1426_s26, 0 }
  0x31   : > { %s1915_s17 = smov (!%p1850_p0, %s977_s17), [#allocation12]  ;;  %s169_s5 = sshll.u32 %s157_s6, 4  ;;  %s1607_s5 = int_to_ptr.vmem [resolvable:$true] %s169_s5 }
  0x32   : > { %s1917_s8 = smov (!%p1850_p0, %s978_s8), 0  ;;  %p895_p8 = scmp.ge.s32.totalorder %s1430_s27, 1 }
  0x33   : > { %s158_s13 = sld [smem:[%s1915_s17 + %s1917_s8]]  ;;  %p197_p9 = scmp.lt.s32.totalorder %s1430_s27, 49 }
  0x34   : > { %s884_s12 = sshll.u32 %s1426_s26, 3  ;;  %s885_s9 = sshll.u32 %s1913_s4, 3 }
  0x35   : > { %p1610_p10 = pnand %p895_p8, %p197_p9  ;;  %s1618_s15 = sadd.s32 %s1422_s25, %s884_s12 }
  0x36   : > { %s1621_s20 = sadd.s32 %s885_s9, %s1909_s30  ;;  %s154_s24 = scalar_lea.sflag [#allocation6], %s153_s28 }
  0x37   : > { %s1873_s29 = scalar_select %p1610_p10, 1, 0 }
  0x38   : > { %s85_s8 = ssub.s32 %s1618_s15, %s1621_s20  ;;  %p1226_p11 = pneg %p1588_p4 }
  0x39   : > { %s159_s22 = sadd.s32 %s1422_s25, %s158_s13  ;;  %s1229_s4 = scalar_lea.hbm %s1839_s1, 4096 }
  0x3a   : > { %s974_s3 = sshll.u32 %s159_s22, 8 }
  0x3b   : > { %s167_s17 = scalar_lea.hbm %s1839_s1, %s974_s3 }
  0x3c   : > { %s1224_s23 = scalar_lea.hbm %s167_s17, 256  ;;  %p1230_p8 = scmp.lt.s32.totalorder %s167_s17, %s1839_s1 }
  0x3d   : > { %p1225_p6 = scmp.ne.s32.totalorder %s167_s17, %s1224_s23  ;;  %p1231_p9 = scmp.lt.s32.totalorder %s1229_s4, %s1224_s23 }
  0x3f   : > { %p1227_p13 = pnand %p1226_p11, %p1225_p6  ;;  %p1232_p0 = por %p1231_p9, %p1230_p8 }
  0x41   : > { %p1228_p3 = pneg %p1227_p13 }
  0x43   : > { %p1233_p2 = pnand %p1232_p0, %p1228_p3 }
  0x45   : > { %1236 = shalt.err (!%p1233_p2)
}
  0x46   : > { %s1237_s3 = scalar_lea.vmem %s1607_s5, 256  ;;  %s1433_s20 = smov [#allocation5]  }
  0x47   : > { %p1238_p1 = scmp.ne.s32.totalorder %s1607_s5, %s1237_s3  ;;  %s1242_s28 = sshll.u32 %s1433_s20, 4  ;;  %s1243_s28 = int_to_ptr.vmem [resolvable:$false] %s1242_s28 }
  0x48   : > { %s1244_s11 = scalar_lea.vmem %s1243_s28, 512  ;;  %p1245_p13 = scmp.lt.s32.totalorder %s1607_s5, %s1243_s28 }
  0x49   : > { %p1240_p12 = pnand %p1238_p1, %p1226_p11  ;;  %p1246_p7 = scmp.lt.s32.totalorder %s1244_s11, %s1237_s3 }
  0x4b   : > { %p1241_p6 = pneg %p1240_p12  ;;  %p1247_p10 = por %p1246_p7, %p1245_p13 }
  0x4d   : > { %p1248_p5 = pnand %p1247_p10, %p1241_p6 }
  0x4f   : > { %1251 = shalt.err (!%p1248_p5)
}
  0x50   : > { %990 = dma.hbm_to_vmem [thread:$0]  (!%p1588_p4), %s167_s17, 256, %s1607_s5, %s154_s24  }
  0x51   : > { %p86_p2 = scmp.eq.s32.totalorder %s85_s8, 0  ;;  %s88_s23 = sadd.s32 1, %s1398_s0 }
  0x52   : > { %p95_p7 = scmp.ne.s32.totalorder %s1398_s0, %s1394_s19  ;;  %p101_p12 = scmp.ne.s32.totalorder %s1394_s19, %s1390_s18 }
  0x53   : > { %s1648_s4 = scalar_select %p86_p2, %s1398_s0, %s88_s23  }
  0x54   : > { %p1874_p5 = scmp.eq.s32.totalorder %s1430_s27, 0  ;;  %p1875_p1 = scmp.ne.s32.totalorder %s1861_s7, 0 }
  0x55   : > { %s176_s6 = sand.u32 1, %s1398_s0   ;;  %s975_s13 = sshll.u32 %s1618_s15, 13 }
  0x56   : > { %p97_p0 = por %p95_p7, %p1874_p5  ;;  %p1654_p10 = por %p101_p12, %p1875_p1 }
  0x57   : > { %s891_s12 = sshll.u32 %s176_s6, 9  ;;  %s188_s24 = scalar_lea.hbm %s1840_s2, %s975_s13 }
  0x58   : > { %s180_s5 = scalar_lea.vmem [#allocation8], %s891_s12  ;;  %p1877_p4 = scmp.lt.s32.totalorder %s1430_s27, 48 }
  0x59   : > { %s189_s17 = sshll.u32 %s180_s5, 4  ;;  %s177_s7 = scalar_lea.sflag [#allocation9], %s176_s6  ;;  %s190_s17 = int_to_ptr.vmem [resolvable:$true] %s189_s17 }
  0x5a   : > { %p1665_p11 = pnand %p1877_p4, %p97_p0  ;;  %s1265_s8 = scalar_lea.vmem %s190_s17, 8192 }
  0x5b   : > { %p1266_p8 = scmp.ne.s32.totalorder %s190_s17, %s1265_s8  ;;  %s1434_s15 = smov [#allocation8]  }
  0x5c   : > { %p1254_p3 = pneg %p1665_p11  ;;  %s1270_s3 = sshll.u32 %s1434_s15, 4  ;;  %s1271_s3 = int_to_ptr.vmem [resolvable:$false] %s1270_s3 }
  0x5d   : > { %s1272_s20 = scalar_lea.vmem %s1271_s3, 16384  ;;  %p1273_p13 = scmp.lt.s32.totalorder %s190_s17, %s1271_s3 }
  0x5e   : > { %p1268_p9 = pnand %p1266_p8, %p1254_p3  ;;  %p1274_p2 = scmp.lt.s32.totalorder %s1272_s20, %s1265_s8 }
  0x60   : > { %p1269_p6 = pneg %p1268_p9  ;;  %p1275_p7 = por %p1274_p2, %p1273_p13 }
  0x62   : > { %p1276_p12 = pnand %p1275_p7, %p1269_p6 }
  0x64   : > { %1279 = shalt.err (!%p1276_p12)
}
  0x65   : > { %s1435_s28 = smov 128   ;;  %s1436_s11 = smov 8  }
  0x66   : > { %993 = dma.hbm_to_vmem [thread:$0]  (!%p1665_p11), %s188_s24, 8192, %s190_s17, %s177_s7, %s1435_s28, %s1435_s28, %s1436_s11  }
  0x67   : > { %p1879_p5 = scmp.ne.s32.totalorder %s1873_s29, 0 }
  0x68   : > { %s203_s23 = sand.u32 (!%p1879_p5), 1, %s1406_s21   ;;  %p1880_p0 = scmp.ne.s32.totalorder (!%p1879_p5), %s1864_s10, 0 }
  0x69   : > { %201 = sbr.rel (%p1879_p5) target bundleno = 431 (0x1af), region = 28  ;;  %s1676_s6 = sshll.u32 (!%p1879_p5), %s203_s23, 4 }
  0x6a   : > { %s204_s13 = scalar_lea.sflag (!%p1879_p5), [#allocation6], %s203_s23  ;;  %s207_s12 = scalar_lea.vmem (!%p1879_p5), [#allocation5], %s1676_s6 }
  0x6e   : > { %1365 = dma.done.wait (%p1880_p0), %s204_s13, 256  }
  0x6f   : > { %1367 = vsyncadd (%p1880_p0), %s204_s13, 4294967040  ;;  %s212_s22 = sand.u32 1, %s1394_s19  }
  0x70   : > { %s897_s9 = sshll.u32 %s212_s22, 9  ;;  %s213_s24 = scalar_lea.sflag [#allocation9], %s212_s22 }
  0x71   : > { %s1684_s29 = scalar_lea.vmem [#allocation8], %s897_s9 }
  0x72   : > { %1369 = dma.done.wait (%p1654_p10), %s213_s24, 8192  }
  0x73   : > { %1371 = vsyncadd (%p1654_p10), %s213_s24, 4294959104  ;;  %s239_s5 = sand.u32 1, %s1382_s16   ;;  %s1881_s10 = sld [smem:[#allocation20_spill]] }
  0x74   : > { %s898_s17 = sshll.u32 %s239_s5, 4 }
  0x75   : > { %s1693_s18 = scalar_lea.vmem [#allocation10], %s898_s17 }
  0x79   : > { %p899_p1 = scmp.ne.s32.totalorder %s1881_s10, 0 }
  0x7b   : > { %250 = sbr.rel (%p899_p1) target bundleno = 130 (0x82), region = 40 }
  0x80   : > { %v1437_v0 = vmov 0.0  }
  0x81   : > { %251 = vst [vmem:[#allocation2] sm:$0xff] %v1437_v0  ;;  %252 = vst [vmem:[#allocation2 + $0x8] sm:$0xff] %v1437_v0 }
  0x82 PF: > { %v1116_v1 = vld [vmem:[%s1684_s29 + $0x74] ss:$8 sps:$4 sm:$0xff]   ;;  %v1120_v3 = vld [vmem:[%s1684_s29 + $0x70] ss:$8 sps:$4 sm:$0xff]   ;;  %v1122_v5 = vld [vmem:[%s1684_s29 + $0x64] ss:$8 sps:$4 sm:$0xff]  }
  0x83   : > { %v1118_v2 = vld [vmem:[%s1684_s29 + $0x174] ss:$8 sps:$4 sm:$0xff]   ;;  %655 = vmatprep.subr.bf16.mxu0 %v1116_v1  ;;  %v1121_v4 = vld [vmem:[%s1684_s29 + $0x170] ss:$8 sps:$4 sm:$0xff]   ;;  %v1124_v6 = vld [vmem:[%s1684_s29 + $0x164] ss:$8 sps:$4 sm:$0xff]  }
  0x84   : > { %696 = vmatprep.subr.bf16.mxu1 %v1118_v2  ;;  %656 = vmatpush1.bf16.msra.mxu0 %v1120_v3  ;;  %v1126_v7 = vld [vmem:[%s1684_s29 + $0x60] ss:$8 sps:$4 sm:$0xff]   ;;  %v1128_v9 = vld [vmem:[%s1684_s29 + $0x54] ss:$8 sps:$4 sm:$0xff]   ;;  %v1132_v11 = vld [vmem:[%s1684_s29 + $0x50] ss:$8 sps:$4 sm:$0xff]  }
  0x85   : > { %697 = vmatpush1.bf16.msra.mxu1 %v1121_v4  ;;  %657 = vmatprep.subr.bf16.mxu0 %v1122_v5  ;;  %v1127_v8 = vld [vmem:[%s1684_s29 + $0x160] ss:$8 sps:$4 sm:$0xff]   ;;  %v1130_v10 = vld [vmem:[%s1684_s29 + $0x154] ss:$8 sps:$4 sm:$0xff]   ;;  %v1133_v12 = vld [vmem:[%s1684_s29 + $0x150] ss:$8 sps:$4 sm:$0xff]  }
  0x86   : > { %698 = vmatprep.subr.bf16.mxu1 %v1124_v6  ;;  %v1134_v13 = vld [vmem:[%s1684_s29 + $0x44] ss:$8 sps:$4 sm:$0xff]   ;;  %v1138_v15 = vld [vmem:[%s1684_s29 + $0x40] ss:$8 sps:$4 sm:$0xff]   ;;  %v1140_v17 = vld [vmem:[%s1684_s29 + $0x34] ss:$8 sps:$4 sm:$0xff]  }
  0x87   : > { %v1136_v14 = vld [vmem:[%s1684_s29 + $0x144] ss:$8 sps:$4 sm:$0xff]   ;;  %v1139_v16 = vld [vmem:[%s1684_s29 + $0x140] ss:$8 sps:$4 sm:$0xff]   ;;  %v1142_v18 = vld [vmem:[%s1684_s29 + $0x134] ss:$8 sps:$4 sm:$0xff]  }
  0x88   : > { %658 = vmatpush1.bf16.msra.mxu0 %v1126_v7  ;;  %v1144_v19 = vld [vmem:[%s1684_s29 + $0x30] ss:$8 sps:$4 sm:$0xff]   ;;  %v1146_v21 = vld [vmem:[%s1684_s29 + $0x24] ss:$8 sps:$4 sm:$0xff]   ;;  %v1150_v23 = vld [vmem:[%s1684_s29 + $0x20] ss:$8 sps:$4 sm:$0xff]  }
  0x89   : > { %699 = vmatpush1.bf16.msra.mxu1 %v1127_v8  ;;  %659 = vmatprep.subr.bf16.mxu0 %v1128_v9  ;;  %v1145_v20 = vld [vmem:[%s1684_s29 + $0x130] ss:$8 sps:$4 sm:$0xff]   ;;  %v1148_v22 = vld [vmem:[%s1684_s29 + $0x124] ss:$8 sps:$4 sm:$0xff]   ;;  %v1151_v24 = vld [vmem:[%s1684_s29 + $0x120] ss:$8 sps:$4 sm:$0xff]  }
  0x8a   : > { %700 = vmatprep.subr.bf16.mxu1 %v1130_v10  ;;  %v1152_v25 = vld [vmem:[%s1684_s29 + $0x14] ss:$8 sps:$4 sm:$0xff]   ;;  %v1156_v27 = vld [vmem:[%s1684_s29 + $0x10] ss:$8 sps:$4 sm:$0xff]   ;;  %v1158_v29 = vld [vmem:[%s1684_s29 + $0x4] ss:$8 sps:$4 sm:$0xff]  }
  0x8b   : > { %v1154_v26 = vld [vmem:[%s1684_s29 + $0x114] ss:$8 sps:$4 sm:$0xff]   ;;  %v1157_v28 = vld [vmem:[%s1684_s29 + $0x110] ss:$8 sps:$4 sm:$0xff]   ;;  %v1160_v30 = vld [vmem:[%s1684_s29 + $0x104] ss:$8 sps:$4 sm:$0xff]  }
  0x8c   : > { %660 = vmatpush1.bf16.msra.mxu0 %v1132_v11  ;;  %v1162_v31 = vld [vmem:[%s1684_s29] ss:$8 sps:$4 sm:$0xff]   ;;  %v1164_v33 = vld [vmem:[%s1684_s29 + $0xf4] ss:$8 sps:$4 sm:$0xff]   ;;  %v1168_v35 = vld [vmem:[%s1684_s29 + $0xf0] ss:$8 sps:$4 sm:$0xff]  }
  0x8d   : > { %701 = vmatpush1.bf16.msra.mxu1 %v1133_v12  ;;  %661 = vmatprep.subr.bf16.mxu0 %v1134_v13  ;;  %v1163_v32 = vld [vmem:[%s1684_s29 + $0x100] ss:$8 sps:$4 sm:$0xff]   ;;  %v1166_v34 = vld [vmem:[%s1684_s29 + $0x1f4] ss:$8 sps:$4 sm:$0xff]   ;;  %v1169_v36 = vld [vmem:[%s1684_s29 + $0x1f0] ss:$8 sps:$4 sm:$0xff]  }
  0x8e   : > { %702 = vmatprep.subr.bf16.mxu1 %v1136_v14  ;;  %v1170_v37 = vld [vmem:[%s1684_s29 + $0xe4] ss:$8 sps:$4 sm:$0xff]   ;;  %v1174_v39 = vld [vmem:[%s1684_s29 + $0xe0] ss:$8 sps:$4 sm:$0xff]   ;;  %v1176_v41 = vld [vmem:[%s1684_s29 + $0xd4] ss:$8 sps:$4 sm:$0xff]  }
  0x8f   : > { %v1172_v38 = vld [vmem:[%s1684_s29 + $0x1e4] ss:$8 sps:$4 sm:$0xff]   ;;  %v1175_v40 = vld [vmem:[%s1684_s29 + $0x1e0] ss:$8 sps:$4 sm:$0xff]   ;;  %v1178_v42 = vld [vmem:[%s1684_s29 + $0x1d4] ss:$8 sps:$4 sm:$0xff]  }
  0x90   : > { %662 = vmatpush1.bf16.msra.mxu0 %v1138_v15  ;;  %v1180_v43 = vld [vmem:[%s1684_s29 + $0xd0] ss:$8 sps:$4 sm:$0xff]   ;;  %v1182_v45 = vld [vmem:[%s1684_s29 + $0xc4] ss:$8 sps:$4 sm:$0xff]   ;;  %v1186_v50 = vld [vmem:[%s1684_s29 + $0xc0] ss:$8 sps:$4 sm:$0xff]  }
  0x91   : > { %703 = vmatpush1.bf16.msra.mxu1 %v1139_v16  ;;  %663 = vmatprep.subr.bf16.mxu0 %v1140_v17  ;;  %v1181_v44 = vld [vmem:[%s1684_s29 + $0x1d0] ss:$8 sps:$4 sm:$0xff]   ;;  %v1184_v46 = vld [vmem:[%s1684_s29 + $0x1c4] ss:$8 sps:$4 sm:$0xff]   ;;  %v1187_v51 = vld [vmem:[%s1684_s29 + $0x1c0] ss:$8 sps:$4 sm:$0xff]  }
  0x92   : > { %704 = vmatprep.subr.bf16.mxu1 %v1142_v18  ;;  %v255_v47 = vld [vmem:[%s207_s12] sm:$0xff]  ;;  %v256_v49 = vld [vmem:[%s207_s12 + $0x8] sm:$0xff]  ;;  %s1882_s14 = sld [smem:[#allocation20_spill]] }
  0x93   : > { %v901_v48 = vcombine.high %v255_v47, %v255_v47  ;;  %v903_v52 = vcombine.high %v256_v49, %v256_v49  ;;  %v1188_v53 = vld [vmem:[%s1684_s29 + $0xb4] ss:$8 sps:$4 sm:$0xff]   ;;  %v1192_v55 = vld [vmem:[%s1684_s29 + $0xb0] ss:$8 sps:$4 sm:$0xff]   ;;  %v1194_v57 = vld [vmem:[%s1684_s29 + $0xa4] ss:$8 sps:$4 sm:$0xff]   ;;  %v900_v5 = vcombine.low %v255_v47, %v255_v47  ;;  %v902_v6 = vcombine.low %v256_v49, %v256_v49 }
  0x94   : > { %664 = vmatpush1.bf16.msra.mxu0 %v1144_v19  ;;  %v1190_v54 = vld [vmem:[%s1684_s29 + $0x1b4] ss:$8 sps:$4 sm:$0xff]   ;;  %v1193_v56 = vld [vmem:[%s1684_s29 + $0x1b0] ss:$8 sps:$4 sm:$0xff]   ;;  %v1196_v58 = vld [vmem:[%s1684_s29 + $0x1a4] ss:$8 sps:$4 sm:$0xff]  }
  0x95   : > { %705 = vmatpush1.bf16.msra.mxu1 %v1145_v20  ;;  %665 = vmatprep.subr.bf16.mxu0 %v1146_v21  ;;  %v1198_v59 = vld [vmem:[%s1684_s29 + $0xa0] ss:$8 sps:$4 sm:$0xff]   ;;  %v1200_v61 = vld [vmem:[%s1684_s29 + $0x94] ss:$8 sps:$4 sm:$0xff]   ;;  %v1204_v63 = vld [vmem:[%s1684_s29 + $0x90] ss:$8 sps:$4 sm:$0xff]  }
  0x96   : > { %706 = vmatprep.subr.bf16.mxu1 %v1148_v22  ;;  %687 = vmatprep.mubr.bf16.mxu0 %v901_v48  ;;  %v1199_v60 = vld [vmem:[%s1684_s29 + $0x1a0] ss:$8 sps:$4 sm:$0xff]   ;;  %v1202_v62 = vld [vmem:[%s1684_s29 + $0x194] ss:$8 sps:$4 sm:$0xff]   ;;  %v1205_v0 = vld [vmem:[%s1684_s29 + $0x190] ss:$8 sps:$4 sm:$0xff]  }
  0x97   : > { %728 = vmatprep.mubr.bf16.mxu1 %v903_v52  ;;  %v1206_v1 = vld [vmem:[%s1684_s29 + $0x84] ss:$8 sps:$4 sm:$0xff]   ;;  %v1210_v3 = vld [vmem:[%s1684_s29 + $0x80] ss:$8 sps:$4 sm:$0xff]   ;;  %v253_v8 = vld [vmem:[#allocation2] sm:$0xff] }
  0x98   : > { %666 = vmatpush1.bf16.msra.mxu0 %v1150_v23  ;;  %v1208_v2 = vld [vmem:[%s1684_s29 + $0x184] ss:$8 sps:$4 sm:$0xff]   ;;  %v1211_v4 = vld [vmem:[%s1684_s29 + $0x180] ss:$8 sps:$4 sm:$0xff]   ;;  %v254_v12 = vld [vmem:[#allocation2 + $0x8] sm:$0xff]  ;;  %p968_p10 = scmp.ne.s32.totalorder %s1882_s14, 7 }
  0x99   : > { %707 = vmatpush1.bf16.msra.mxu1 %v1151_v24  ;;  %667 = vmatprep.subr.bf16.mxu0 %v1152_v25 }
  0x9a   : > { %708 = vmatprep.subr.bf16.mxu1 %v1154_v26 }
  0x9c   : > { %668 = vmatpush1.bf16.msra.mxu0 %v1156_v27 }
  0x9d   : > { %709 = vmatpush1.bf16.msra.mxu1 %v1157_v28  ;;  %669 = vmatprep.subr.bf16.mxu0 %v1158_v29 }
  0x9e   : > { %710 = vmatprep.subr.bf16.mxu1 %v1160_v30 }
  0xa0   : > { %670 = vmatpush1.bf16.msra.mxu0 %v1162_v31 }
  0xa1   : > { %711 = vmatpush1.bf16.msra.mxu1 %v1163_v32  ;;  %671 = vmatprep.subr.bf16.mxu0 %v1164_v33 }
  0xa2   : > { %712 = vmatprep.subr.bf16.mxu1 %v1166_v34 }
  0xa4   : > { %672 = vmatpush2.bf16.msra.mxu0 %v1168_v35 }
  0xa5   : > { %713 = vmatpush2.bf16.msra.mxu1 %v1169_v36  ;;  %673 = vmatprep.subr.bf16.mxu0 %v1170_v37 }
  0xa6   : > { %714 = vmatprep.subr.bf16.mxu1 %v1172_v38 }
  0xa8   : > { %674 = vmatpush2.bf16.msra.mxu0 %v1174_v39 }
  0xa9   : > { %715 = vmatpush2.bf16.msra.mxu1 %v1175_v40  ;;  %675 = vmatprep.subr.bf16.mxu0 %v1176_v41 }
  0xaa   : > { %716 = vmatprep.subr.bf16.mxu1 %v1178_v42 }
  0xac   : > { %676 = vmatpush2.bf16.msra.mxu0 %v1180_v43 }
  0xad   : > { %717 = vmatpush2.bf16.msra.mxu1 %v1181_v44  ;;  %677 = vmatprep.subr.bf16.mxu0 %v1182_v45 }
  0xae   : > { %718 = vmatprep.subr.bf16.mxu1 %v1184_v46 }
  0xb0   : > { %678 = vmatpush2.bf16.msra.mxu0 %v1186_v50 }
  0xb1   : > { %719 = vmatpush2.bf16.msra.mxu1 %v1187_v51  ;;  %679 = vmatprep.subr.bf16.mxu0 %v1188_v53 }
  0xb2   : > { %720 = vmatprep.subr.bf16.mxu1 %v1190_v54 }
  0xb4   : > { %680 = vmatpush2.bf16.msra.mxu0 %v1192_v55 }
  0xb5   : > { %721 = vmatpush2.bf16.msra.mxu1 %v1193_v56  ;;  %681 = vmatprep.subr.bf16.mxu0 %v1194_v57 }
  0xb6   : > { %722 = vmatprep.subr.bf16.mxu1 %v1196_v58 }
  0xb8   : > { %682 = vmatpush2.bf16.msra.mxu0 %v1198_v59 }
  0xb9   : > { %723 = vmatpush2.bf16.msra.mxu1 %v1199_v60  ;;  %683 = vmatprep.subr.bf16.mxu0 %v1200_v61 }
  0xba   : > { %724 = vmatprep.subr.bf16.mxu1 %v1202_v62 }
  0xbc   : > { %684 = vmatpush2.bf16.msra.mxu0 %v1204_v63 }
  0xbd   : > { %725 = vmatpush2.bf16.msra.mxu1 %v1205_v0  ;;  %685 = vmatprep.subr.bf16.mxu0 %v1206_v1 }
  0xbe   : > { %726 = vmatprep.subr.bf16.mxu1 %v1208_v2 }
  0xc0   : > { %686 = vmatpush2.bf16.msra.mxu0 %v1210_v3 }
  0xc1   : > { %727 = vmatpush2.bf16.msra.mxu1 %v1211_v4 }
  0xc3   : > { %688 = vmatmul.mubr.bf16.vlgmr.msra.gmra.mxu0 %v900_v5 }
  0xc4   : > { %729 = vmatmul.mubr.bf16.vlgmr.msra.gmra.mxu1 %v902_v6 }
 0x183   : > { %v689_v7 = vpop.f32.mrf.mxu0 }
 0x184   : > { %v730_v9 = vpop.f32.mrf.mxu1 }
 0x185   : > { %v731_v10 = vadd.f32 %v730_v9, %v689_v7  ;;  %v691_v11 = vpop.f32.mrf.mxu0 }
 0x186   : > { %v732_v13 = vpop.f32.mrf.mxu1 }
 0x187   : > { %v737_v14 = vadd.f32 %v731_v10, %v253_v8  ;;  %v733_v15 = vadd.f32 %v732_v13, %v691_v11  ;;  %v693_v16 = vpop.f32.mrf.mxu0  ;;  %744 = sbr.rel (%p968_p10) target bundleno = 404 (0x194), region = 44 }
 0x188   : > { %v734_v17 = vpop.f32.mrf.mxu1 }
 0x189   : > { %739 = vst [vmem:[#allocation2] sm:$0xff] %v737_v14  ;;  %v738_v18 = vadd.f32 %v733_v15, %v254_v12  ;;  %v694_v19 = vpop.f32.mrf.mxu0 }
 0x18a   : > { %v735_v20 = vpop.f32.mrf.mxu1 }
 0x18b   : > { %740 = vst [vmem:[#allocation2 + $0x8] sm:$0xff] %v738_v18 }
 0x190   : > { %v745_v21 = vld [vmem:[#allocation2] sm:$0xff] }
 0x191   : > { %747 = vst [vmem:[%s1693_s18] sm:$0xff] %v745_v21 }
 0x192   : > { %v746_v22 = vld [vmem:[#allocation2 + $0x8] sm:$0xff] }
 0x193   : > { %748 = vst [vmem:[%s1693_s18 + $0x8] sm:$0xff] %v746_v22 }
 0x194 PF: > { %s1883_s7 = sld [smem:[#allocation21_spill]]  ;;  %s766_s23 = sshll.u32 %s1693_s18, 4  ;;  %s767_s23 = int_to_ptr.vmem [resolvable:$true] %s766_s23 }
 0x195   : > { %s1884_s8 = sld [smem:[#allocation24_spill]]  ;;  %s750_s6 = scalar_lea.sflag [#allocation7], %s239_s5 }
 0x196   : > { %s1885_s28 = sld [smem:[#allocation27_spill]]  ;;  %s1280_s13 = scalar_lea.vmem %s767_s23, 256 }
 0x197   : > { %p1281_p4 = scmp.ne.s32.totalorder %s767_s23, %s1280_s13  ;;  %s1438_s12 = smov [#allocation10]  }
 0x198   : > { %s1284_s22 = sshll.u32 %s1438_s12, 4  ;;  %s1285_s22 = int_to_ptr.vmem [resolvable:$false] %s1284_s22 }
 0x199   : > { %s1286_s9 = scalar_lea.vmem %s1285_s22, 512  ;;  %p1287_p9 = scmp.lt.s32.totalorder %s767_s23, %s1285_s22 }
 0x19a   : > { %s976_s15 = sshll.u32 %s1883_s7, 8  ;;  %p1288_p6 = scmp.lt.s32.totalorder %s1286_s9, %s1280_s13 }
 0x19b   : > { %p1886_p11 = scmp.ne.s32.totalorder %s1884_s8, 0 }
 0x19c   : > { %s764_s11 = scalar_lea.hbm %s1885_s28, %s976_s15  ;;  %p1289_p13 = por %p1288_p6, %p1287_p9 }
 0x19d   : > { %p1282_p3 = pnand %p1281_p4, %p1886_p11 }
 0x19f   : > { %p1283_p8 = pneg %p1282_p3 }
 0x1a1   : > { %p1290_p2 = pnand %p1289_p13, %p1283_p8 }
 0x1a3   : > { %1293 = shalt.err (!%p1290_p2)
}
 0x1a4   : > { %s1294_s24 = scalar_lea.hbm %s764_s11, 256  ;;  %s1298_s17 = scalar_lea.hbm %s1885_s28, 1536 }
 0x1a5   : > { %p1295_p7 = scmp.ne.s32.totalorder %s764_s11, %s1294_s24  ;;  %p1299_p0 = scmp.lt.s32.totalorder %s764_s11, %s1885_s28 }
 0x1a6   : > { %p1300_p1 = scmp.lt.s32.totalorder %s1298_s17, %s1294_s24 }
 0x1a7   : > { %p1296_p12 = pnand %p1295_p7, %p1886_p11 }
 0x1a8   : > { %p1301_p10 = por %p1300_p1, %p1299_p0 }
 0x1a9   : > { %p1297_p5 = pneg %p1296_p12 }
 0x1ab   : > { %p1302_p4 = pnand %p1301_p10, %p1297_p5 }
 0x1ad   : > { %1305 = shalt.err (!%p1302_p4)
}
 0x1ae   : > { %983 = dma.vmem_to_hbm [thread:$0]  (%p1886_p11), %s767_s23, 256, %s764_s11, %s750_s6  }
 0x1af PF: > { %s1887_s14 = sld [smem:[#allocation17_spill]]  ;;  %p999_p3 = scmp.ge.s32.totalorder %s1430_s27, 2 }
 0x1b0   : > { %s1888_s7 = sld [smem:[#allocation25_spill]] }
 0x1b5   : > { %s778_s15 = sand.u32 1, %s1887_s14  }
 0x1b6   : > { %p1889_p8 = scmp.ne.s32.totalorder %s1888_s7, 0  ;;  %s779_s3 = scalar_lea.sflag [#allocation7], %s778_s15 }
 0x1b8   : > { %p995_p9 = pnand %p999_p3, %p1889_p8 }
 0x1ba   : > { %p996_p6 = pneg %p995_p9 }
 0x1bc   : > { %1373 = dma.done.wait (%p996_p6), %s779_s3, 256  }
 0x1bd   : > { %1375 = vsyncadd (%p996_p6), %s779_s3, 4294967040  ;;  %s26_s27 = sadd.s32 1, %s1430_s27   ;;  %s1891_s8 = sld [smem:[#allocation18_spill]] }
 0x1be   : > { %p1791_p13 = scmp.ge.s32.totalorder %s26_s27, 50   ;;  %s1892_s17 = sld [smem:[#allocation23_spill]] }
 0x1bf   : > { %s1893_s11 = sld [smem:[#allocation19_spill]]  ;;  %s1897_s15 = smov %s1382_s16 }
 0x1c0   : > { %s1894_s22 = sld [smem:[#allocation26_spill]]  ;;  %s1899_s18 = smov %s1394_s19 }
 0x1c1   : > { %s1895_s6 = sld [smem:[#allocation22_spill]]  ;;  %s1900_s19 = smov %s1398_s0 }
 0x1c2   : > { %s1901_s0 = smov %s1648_s4  ;;  %s1902_s20 = smov %s1406_s21 }
 0x1c3   : > { %s1898_s16 = smov %s1891_s8  ;;  %s1904_s23 = smov %s1422_s25 }
 0x1c4   : > { %s1905_s24 = smov %s1426_s26  ;;  %s1906_s25 = smov %s1909_s30 }
 0x1c5   : > { %s1903_s21 = smov %s1893_s11  ;;  %25 = sbr.rel (!%p1791_p13) target bundleno = 18 (0x12), region = 94 }
 0x1c7   : > { %s1907_s26 = smov %s1895_s6 }
 0x1ca   :  { %784 = vsyncpa [#allocation6], 1 }
 0x1cb   :  { %786 = vsyncpa [#allocation6 + $0x1], 1 }
 0x1cc   :  { %787 = vsyncpa [#allocation9], 1 }
 0x1cd   :  { %789 = vsyncpa [#allocation9 + $0x1], 1 }
 0x1ce   :  { %790 = vsyncpa [#allocation7], 1 }
 0x1cf   :  { %792 = vsyncpa [#allocation7 + $0x1], 1 }

</bundles_post_ra>
